<compile_context>
chip_gen: v7x
topology: tpu7x:2x2x1
jax: 0.10.0
libtpu: 0.0.40
codegen_flags: <defaults>
</compile_context>

<pallas_src>
import functools

import jax
import jax.numpy as jnp
from jax.experimental import pallas as pl
from jax.experimental.pallas import tpu as pltpu

INPUT_SIZE = 2
OUTPUT_SIZE = 2

LANE = 128
MAX_TILE_B = 32768        # batch lanes per block (~256 KiB per operand block)
SPLIT_MIN_B = 1024        # above this, force >=2 grid tiles (v7x has 2 TCs)
FALLBACK_MAX_B = 256      # below this, a fused XLA path beats kernel launch


def _round_up(n: int, m: int) -> int:
    return ((n + m - 1) // m) * m


def _linear_kernel(x_ref, w_ref, b_ref, o_ref):
    # x_ref: (f_in,  TILE_B)  -- batch on the lane axis
    # w_ref: (f_out, f_in)    -- resident every grid step
    # b_ref: (f_out, 1)
    # o_ref: (f_out, TILE_B)  -- lane-dense output (only useful bytes written)
    acc = jnp.broadcast_to(b_ref[...], o_ref.shape).astype(jnp.float32)
    # f_in is tiny and static -> unrolled VPU broadcast-FMAs, no MXU needed.
    for k in range(x_ref.shape[0]):
        acc = acc + w_ref[:, k:k + 1] * x_ref[k:k + 1, :].astype(jnp.float32)
    o_ref[...] = acc.astype(o_ref.dtype)


def prepare_params(weight, bias):
    """One-time packing of PyTorch-convention params (done at module init).

    weight: (output_size, input_size) float32
    bias:   (output_size,) float32
    returns w_packed (f_out, f_in), b_packed (f_out, 1)
    """
    f_out, f_in = weight.shape
    assert bias.shape == (f_out,)
    w_packed = jnp.asarray(weight, jnp.float32)                   # (f_out, f_in)
    b_packed = jnp.asarray(bias, jnp.float32).reshape(f_out, 1)   # (f_out, 1)
    return w_packed, b_packed


def _choose_tile(batch: int) -> int:
    if batch > SPLIT_MIN_B:
        target = -(-batch // 2)   # ceil(B/2): guarantees >=2 grid tiles (v7x)
    else:
        target = batch
    return min(MAX_TILE_B, _round_up(target, LANE))


@functools.partial(jax.jit, static_argnames=("min_pallas_batch",))
def linear_classifier_forward(x, w_packed, b_packed, *,
                              min_pallas_batch=FALLBACK_MAX_B):
    """Pallas equivalent of nn.Linear(input_size, output_size)(x) -> (B, f_out)."""
    B, f_in = x.shape
    f_out = w_packed.shape[0]
    assert B >= 1
    assert w_packed.shape == (f_out, f_in), (
        f"packed weight shape {w_packed.shape} != ({f_out}, {f_in})")
    assert b_packed.shape == (f_out, 1), f"packed bias shape {b_packed.shape}"

    if B < min_pallas_batch:
        # Tiny batch: fixed pallas_call launch overhead dominates; fused XLA path.
        return x.astype(jnp.float32) @ w_packed.T + b_packed[:, 0]

    x_t = x.T                                    # (f_in, B): batch -> lane axis
    tile_b = _choose_tile(B)
    num_tiles = pl.cdiv(B, tile_b)

    if num_tiles > 1:
        grid = (num_tiles,)
        data_map = lambda i: (0, i)              # i-th batch tile
        par_map = lambda i: (0, 0)               # params resident every step
        x_block = (f_in, tile_b)
        o_block = (f_out, tile_b)
        compiler_params = pltpu.CompilerParams(
            dimension_semantics=("parallel",))   # megacore-shard batch tiles
    else:
        grid = ()                                # single tile: no pipeline loop
        data_map = lambda: (0, 0)
        par_map = lambda: (0, 0)
        x_block = (f_in, B)                      # full-array block (no padding)
        o_block = (f_out, B)
        compiler_params = None

    out_t = pl.pallas_call(
        _linear_kernel,
        out_shape=jax.ShapeDtypeStruct((f_out, B), jnp.float32),
        grid=grid,
        in_specs=[
            pl.BlockSpec(x_block, data_map),
            pl.BlockSpec((f_out, f_in), par_map),
            pl.BlockSpec((f_out, 1), par_map),
        ],
        out_specs=pl.BlockSpec(o_block, data_map),
        compiler_params=compiler_params,
    )(x_t, w_packed, b_packed)

    # Tiny (f_out, B) -> (B, f_out) relayout (16 B/row) to keep nn.Linear's
    # output convention; this replaces the old full-128-lane-slab slice pass.
    return out_t.T


def init_params(key, input_size, output_size):
    """Deterministic init mimicking nn.Linear's default (uniform +-1/sqrt(fan_in))."""
    k_w, k_b = jax.random.split(key)
    bound = 1.0 / jnp.sqrt(jnp.float32(input_size))
    weight = jax.random.uniform(
        k_w, (output_size, input_size), jnp.float32, minval=-bound, maxval=bound)
    bias = jax.random.uniform(
        k_b, (output_size,), jnp.float32, minval=-bound, maxval=bound)
    return weight, bias


if __name__ == "__main__":
    key = jax.random.PRNGKey(0)
    k_x, k_p, k_x2 = jax.random.split(key, 3)

    weight, bias = init_params(k_p, INPUT_SIZE, OUTPUT_SIZE)
    # One-time packing (done at "module init", not per forward call).
    w_packed, b_packed = prepare_params(weight, bias)

    # Small batch, forced through the Pallas kernel (single-tile / no-grid path).
    batch = 4
    x = jax.random.normal(k_x, (batch, INPUT_SIZE), jnp.float32)
    out = linear_classifier_forward(x, w_packed, b_packed, min_pallas_batch=0)
    out = jax.block_until_ready(out)
    ref = x @ weight.T + bias
    assert out.shape == (batch, OUTPUT_SIZE)
    assert jnp.allclose(out, ref, atol=1e-5, rtol=1e-5), (out, ref)

    # Larger odd batch: exercises the >=2-tile "parallel" grid (v7x megacore)
    # and the cdiv overhang masking (no explicit batch padding).
    batch2 = 1040
    x2 = jax.random.normal(k_x2, (batch2, INPUT_SIZE), jnp.float32)
    out2 = linear_classifier_forward(x2, w_packed, b_packed)
    out2 = jax.block_until_ready(out2)
    ref2 = x2 @ weight.T + bias
    assert out2.shape == (batch2, OUTPUT_SIZE)
    assert jnp.allclose(out2, ref2, atol=1e-5, rtol=1e-5)

    # Default dispatch for tiny batches (pure-jnp fallback path).
    out3 = jax.block_until_ready(linear_classifier_forward(x, w_packed, b_packed))
    assert jnp.allclose(out3, ref, atol=1e-5, rtol=1e-5)

    print("KERNEL_OK")
</pallas_src>

<mosaic_0001>
module attributes {stable_mosaic.version = 11 : i64} {
  func.func @_linear_kernel(%arg0: memref<2x4xf32, #tpu.memory_space<vmem>>, %arg1: memref<2x2xf32, #tpu.memory_space<vmem>>, %arg2: memref<2x1xf32, #tpu.memory_space<vmem>>, %arg3: memref<2x4xf32, #tpu.memory_space<vmem>>) attributes {dimension_semantics = [], scalar_prefetch = 0 : i64, scratch_operands = 0 : i64, tpu.core_type = #tpu.core_type<tc>} {
    %c0 = arith.constant 0 : index
    %c0_0 = arith.constant 0 : index
    %0 = vector.load %arg2[%c0, %c0_0] : memref<2x1xf32, #tpu.memory_space<vmem>>, vector<2x1xf32>
    %1 = vector.shape_cast %0 : vector<2x1xf32> to vector<2x1xf32>
    %2 = vector.broadcast %1 : vector<2x1xf32> to vector<2x4xf32>
    %c0_1 = arith.constant 0 : index
    %c0_2 = arith.constant 0 : index
    %3 = vector.load %arg1[%c0_1, %c0_2] : memref<2x2xf32, #tpu.memory_space<vmem>>, vector<2x1xf32>
    %c0_3 = arith.constant 0 : index
    %c0_4 = arith.constant 0 : index
    %4 = vector.load %arg0[%c0_3, %c0_4] : memref<2x4xf32, #tpu.memory_space<vmem>>, vector<1x4xf32>
    %5 = vector.broadcast %3 : vector<2x1xf32> to vector<2x4xf32>
    %6 = vector.broadcast %4 : vector<1x4xf32> to vector<2x4xf32>
    %7 = arith.mulf %5, %6 : vector<2x4xf32>
    %8 = arith.addf %2, %7 : vector<2x4xf32>
    %c0_5 = arith.constant 0 : index
    %c1 = arith.constant 1 : index
    %9 = vector.load %arg1[%c0_5, %c1] : memref<2x2xf32, #tpu.memory_space<vmem>>, vector<2x1xf32>
    %c1_6 = arith.constant 1 : index
    %c0_7 = arith.constant 0 : index
    %10 = vector.load %arg0[%c1_6, %c0_7] : memref<2x4xf32, #tpu.memory_space<vmem>>, vector<1x4xf32>
    %11 = vector.broadcast %9 : vector<2x1xf32> to vector<2x4xf32>
    %12 = vector.broadcast %10 : vector<1x4xf32> to vector<2x4xf32>
    %13 = arith.mulf %11, %12 : vector<2x4xf32>
    %14 = arith.addf %8, %13 : vector<2x4xf32>
    %c0_8 = arith.constant 0 : index
    %c0_9 = arith.constant 0 : index
    %15 = vector.load %arg3[%c0_8, %c0_9] : memref<2x4xf32, #tpu.memory_space<vmem>>, vector<2x4xf32>
    tpu.vector_store %arg3[%c0_8, %c0_9], %14 {strides = array<i32>} : memref<2x4xf32, #tpu.memory_space<vmem>>, vector<2x4xf32>,
    return
  }
}

</mosaic_0001>

<bundles_post_ra>
// kernel: linear_classifier_forward.1
= control target key start
LH: loop header
LB: loop body
LE: loop exit
PB: predicated region body
PF: predicated region fallthrough
CT: control target
= control target key end

     0   :  { %v93_v1 = vmov 0   ;;  %v94_v2 = vmov 1   ;;  %s140_s0 = inlined_call_operand.vmem [shape: f32[2,4], index: 0, kind: input, shape index: {}]   ;;  %s141_s1 = inlined_call_operand.vmem [shape: f32[2,2], index: 1, kind: input, shape index: {}]   ;;  %s142_s2 = inlined_call_operand.vmem [shape: f32[2,1], index: 2, kind: input, shape index: {}]   ;;  %s143_s3 = inlined_call_operand.hbm [shape: f32[2,4], index: 3, kind: output, shape index: {}]  }
   0x1   :  { %v21_v0 = vld [vmem:[%s141_s1] sm:$0x3]  ;;  %66 = vset.pattern.permute.xlu0 %v93_v1  ;;  %67 = vset.pattern.permute.xlu1 %v94_v2 }
   0x2   :  { %8 = vsyncpa [#allocation3], 0  ;;  %25 = vperm.xlu0 %66, %v21_v0   ;;  %36 = vperm.xlu1 %67, %v21_v0   ;;  %v15_v3 = vld [vmem:[%s142_s2] sm:$0x3]  ;;  %s95_s19 = smov [#allocation2]   ;;  %vm45_vm0 = vcmask 25600  }
   0x3   :  { %v61_v4 = vld [vmem:[%s140_s0] ss:$0 sm:$0xff]  ;;  %v62_v6 = vld [vmem:[%s140_s0 + $0x1] ss:$0 sm:$0xff]  ;;  %s53_s20 = sshll.u32 %s95_s19, 4  ;;  %s54_s20 = int_to_ptr.vmem [resolvable:$true] %s53_s20 }
   0x4   :  { %s69_s2 = scalar_lea.vmem %s54_s20, 32  ;;  %p74_p1 = scmp.lt.s32.totalorder %s54_s20, %s54_s20 }
   0x5   :  { %p70_p0 = scmp.ne.s32.totalorder %s54_s20, %s69_s2  ;;  %p75_p2 = scmp.lt.s32.totalorder %s69_s2, %s69_s2 }
   0x6   :  { %18 = vperm.xlu0 %66, %v15_v3  }
   0x7   :  { %p76_p3 = por %p75_p2, %p74_p1 }
   0x9   :  { %p77_p4 = pnand %p76_p3, %p70_p0 }
   0xa   :  { %68 = vset.pattern.permute.xlu0 %v94_v2 }
  0x81   :  { %v26_v5 = vpop.permute.xlu0 %25  ;;  %v37_v7 = vpop.permute.xlu1 %36 }
  0x82   :  { %v32_v8 = vmul.f32 %v61_v4, %v26_v5  ;;  %v43_v9 = vmul.f32 %v62_v6, %v37_v7 }
  0x85   :  { %v19_v10 = vpop.permute.xlu0 %18 }
  0x86   :  { %v33_v11 = vadd.f32 %v32_v8, %v19_v10 }
  0x88   :  { %v44_v12 = vadd.f32 %v43_v9, %v33_v11 }
  0x8a   :  { %46 = vst.msk [vmem:[#allocation2] sm:$0x3] %vm45_vm0, %v44_v12 }
  0x8b   :  { %80 = shalt.err (!%p77_p4)
}
  0x8c   :  { %s81_s22 = scalar_lea.hbm %s143_s3, 32 }
  0x8d   :  { %p82_p5 = scmp.ne.s32.totalorder %s143_s3, %s81_s22  ;;  %p85_p6 = scmp.lt.u32.totalorder %s81_s22, %s143_s3 }
  0x8f   :  { %p87_p7 = pnand %p85_p6, %p82_p5 }
  0x91   :  { %90 = shalt.err (!%p87_p7)
}
  0x92   :  { %56 = dma.vmem_to_hbm [thread:$0]  %s54_s20, 32, %s143_s3, [#allocation3]  }
  0x93   :  { %91 = dma.done.wait [#allocation3], 32  }
  0x94   :  { %92 = vsyncadd [#allocation3], 4294967264 }
  0x95   :  { %60 = vsyncpa [#allocation3], 1 }

</bundles_post_ra>
